<compile_context>
chip_gen: v6e
topology: v6e:2x2x1
jax: 0.10.0
libtpu: 0.0.40
codegen_flags: <defaults>
</compile_context>

<pallas_src>
import functools
import math

import jax
import jax.numpy as jnp
from jax.experimental import pallas as pl
from jax.experimental.pallas import tpu as pltpu

# SSIM constants (pytorch_msssim defaults with data_range=255)
ALPHA = 0.5
DATA_RANGE = 255.0
K1, K2 = 0.01, 0.03
C1 = (K1 * DATA_RANGE) ** 2
C2 = (K2 * DATA_RANGE) ** 2
WIN_SIZE = 11
WIN_SIGMA = 1.5


def _gaussian_1d(size=WIN_SIZE, sigma=WIN_SIGMA):
    coords = jnp.arange(size, dtype=jnp.float32) - (size // 2)
    g = jnp.exp(-(coords ** 2) / (2.0 * sigma ** 2))
    return g / jnp.sum(g)


def _conv_matrix(n, win):
    """(n, n_out) matrix M with M[w, o] = win[w - o]; x @ M == valid 1-D corr."""
    k = win.shape[0]
    n_out = n - k + 1
    rows = jnp.arange(n)[:, None]
    cols = jnp.arange(n_out)[None, :]
    idx = rows - cols
    valid = (idx >= 0) & (idx < k)
    return jnp.where(valid, win[jnp.clip(idx, 0, k - 1)], 0.0).astype(jnp.float32)


def _l1_dssim_kernel(x_ref, y_ref, hm_ref, wbd_ref, out_ref, *, batch, wo):
    # x_ref / y_ref: (H, B*W) — H in sublanes, (image, column) folded into lanes.
    x = x_ref[...]
    y = y_ref[...]

    # Fuse the five Gaussian-filter inputs into ONE pair of matmuls:
    #   stacked (H, 5*B*W) = [x | y | x*x | y*y | x*y]      (concat along lanes)
    #   t = hm @ stacked        -> (Ho, 5*B*W)   valid conv along H, all inputs
    #   u = t @ blockdiag(wm)   -> (Ho, 5*B*Wo)  valid conv along W, per image
    stacked = jnp.concatenate([x, y, x * x, y * y, x * y], axis=1)
    t = jnp.dot(hm_ref[...], stacked, preferred_element_type=jnp.float32)
    u = jnp.dot(t, wbd_ref[...], preferred_element_type=jnp.float32)

    g = batch * wo
    mu1 = u[:, 0 * g:1 * g]
    mu2 = u[:, 1 * g:2 * g]
    ex2 = u[:, 2 * g:3 * g]
    ey2 = u[:, 3 * g:4 * g]
    exy = u[:, 4 * g:5 * g]

    mu1_sq = mu1 * mu1
    mu2_sq = mu2 * mu2
    mu1_mu2 = mu1 * mu2
    sigma1_sq = ex2 - mu1_sq
    sigma2_sq = ey2 - mu2_sq
    sigma12 = exy - mu1_mu2

    cs_map = (2.0 * sigma12 + C2) / (sigma1_sq + sigma2_sq + C2)
    ssim_map = ((2.0 * mu1_mu2 + C1) / (mu1_sq + mu2_sq + C1)) * cs_map

    l1_sum = jnp.sum(jnp.abs(x - y))
    ssim_sum = jnp.sum(ssim_map)

    # Lane-dense per-step partial output (one unmasked (8,128) store):
    #   lane 0 -> l1 partial sum, lane 1 -> ssim partial sum, rest zero.
    lane = jax.lax.broadcasted_iota(jnp.int32, out_ref.shape, 2)
    out_ref[...] = (jnp.where(lane == 0, l1_sum, 0.0) +
                    jnp.where(lane == 1, ssim_sum, 0.0))


def _choose_batch(nc, w):
    """Images per grid step: lane-dense blocks that satisfy the (., 128) rule."""
    if nc * w <= 1024:
        return nc                        # single grid step; block == full array
    return 128 // math.gcd(w, 128)       # smallest B with (B*W) % 128 == 0


def l1_dssim_loss(output, target, alpha=ALPHA):
    """output, target: (N, C, H, W) — matches the PyTorch NCHW convention."""
    N, C, H, W = output.shape
    NC = N * C
    Ho, Wo = H - WIN_SIZE + 1, W - WIN_SIZE + 1
    assert Ho > 0 and Wo > 0, "spatial dims must exceed the 11x11 SSIM window"

    B = _choose_batch(NC, W)
    n_steps = pl.cdiv(NC, B)
    NCp = n_steps * B
    n_pad = NCp - NC

    def to_lane_major(v):
        v = v.reshape(NC, H, W).astype(jnp.float32)
        if n_pad:
            v = jnp.concatenate([v, jnp.zeros((n_pad, H, W), jnp.float32)], axis=0)
        # (NCp, H, W) -> (H, NCp, W) -> (H, NCp*W): H in sublanes, images in lanes.
        return v.transpose(1, 0, 2).reshape(H, NCp * W)

    x = to_lane_major(output)
    y = to_lane_major(target)

    win = _gaussian_1d()
    hmat = _conv_matrix(H, win).T                    # (Ho, H): valid conv along H
    wmat = _conv_matrix(W, win)                      # (W, Wo): valid conv along W
    # Block-diagonal W-conv matrix — one block per (filter-input, image) pair, so
    # the W-direction filtering of the whole fused stack is a single matmul.
    wbd = jnp.kron(jnp.eye(5 * B, dtype=jnp.float32), wmat)   # (5*B*W, 5*B*Wo)
    # TODO(synk): for very large W (or B*W) the block-diagonal operand and the
    # whole-image blocks outgrow VMEM; add W-strip tiling with an 11-pixel halo.

    kernel = functools.partial(_l1_dssim_kernel, batch=B, wo=Wo)

    partials = pl.pallas_call(
        kernel,
        out_shape=jax.ShapeDtypeStruct((n_steps, 8, 128), jnp.float32),
        grid=(n_steps,),
        in_specs=[
            pl.BlockSpec((H, B * W), lambda i: (0, i)),              # x block
            pl.BlockSpec((H, B * W), lambda i: (0, i)),              # y block
            pl.BlockSpec((Ho, H), lambda i: (0, 0)),                 # H-conv matrix
            pl.BlockSpec((5 * B * W, 5 * B * Wo), lambda i: (0, 0)), # blockdiag W-conv
        ],
        out_specs=pl.BlockSpec((1, 8, 128), lambda i: (i, 0, 0)),
        compiler_params=pltpu.CompilerParams(
            dimension_semantics=("parallel",),      # independent steps -> both v7x TCs
            vmem_limit_bytes=32 * 1024 * 1024,
        ),
    )(x, y, hmat, wbd)

    l1_total = jnp.sum(partials[:, 0, 0])
    # Zero-padded images contribute exactly Ho*Wo (ssim==1 per pixel); remove them.
    ssim_total = jnp.sum(partials[:, 0, 1]) - n_pad * float(Ho * Wo)

    l1_mean = l1_total / float(NC * H * W)
    ssim_mean = ssim_total / float(NC * Ho * Wo)
    return alpha * l1_mean + (1.0 - alpha) * (1.0 - ssim_mean)


def _reference_loss(output, target, alpha=ALPHA):
    """Independent pure-JAX reference using a 2-D Gaussian depthwise conv."""
    N, C, H, W = output.shape
    g = _gaussian_1d()
    w2d = jnp.outer(g, g)                                   # (11, 11)
    kern = jnp.tile(w2d[None, None], (C, 1, 1, 1))          # (C, 1, 11, 11)

    def filt(v):
        return jax.lax.conv_general_dilated(
            v.astype(jnp.float32), kern, window_strides=(1, 1), padding="VALID",
            dimension_numbers=("NCHW", "OIHW", "NCHW"), feature_group_count=C)

    x = output.astype(jnp.float32)
    y = target.astype(jnp.float32)
    mu1, mu2 = filt(x), filt(y)
    mu1_sq, mu2_sq, mu1_mu2 = mu1 * mu1, mu2 * mu2, mu1 * mu2
    s1 = filt(x * x) - mu1_sq
    s2 = filt(y * y) - mu2_sq
    s12 = filt(x * y) - mu1_mu2
    cs = (2 * s12 + C2) / (s1 + s2 + C2)
    ssim_map = ((2 * mu1_mu2 + C1) / (mu1_sq + mu2_sq + C1)) * cs
    ssim_val = jnp.mean(ssim_map)
    l1 = jnp.mean(jnp.abs(x - y))
    return alpha * l1 + (1 - alpha) * (1 - ssim_val)


if __name__ == "__main__":
    key = jax.random.PRNGKey(0)
    k1, k2 = jax.random.split(key)
    N, C, H, W = 2, 3, 16, 16          # channel=3 as required by SSIM(channel=3)
    output = jax.random.uniform(k1, (N, C, H, W), jnp.float32, 0.0, 255.0)
    target = jax.random.uniform(k2, (N, C, H, W), jnp.float32, 0.0, 255.0)

    loss = jax.block_until_ready(l1_dssim_loss(output, target))
    ref = jax.block_until_ready(_reference_loss(output, target))

    assert jnp.isfinite(loss), "kernel produced non-finite loss"
    assert jnp.allclose(loss, ref, rtol=1e-4, atol=1e-4), (loss, ref)
    print("KERNEL_OK")
</pallas_src>

<mosaic_0001>
module attributes {stable_mosaic.version = 11 : i64} {
  func.func @_l1_dssim_kernel(%arg0: i32, %arg1: memref<16x96xf32, #tpu.memory_space<vmem>>, %arg2: memref<16x96xf32, #tpu.memory_space<vmem>>, %arg3: memref<6x16xf32, #tpu.memory_space<vmem>>, %arg4: memref<480x180xf32, #tpu.memory_space<vmem>>, %arg5: memref<1x8x128xf32, #tpu.memory_space<vmem>>) attributes {dimension_semantics = [#tpu.dimension_semantics<parallel>], iteration_bounds = array<i64: 1>, scalar_prefetch = 0 : i64, scratch_operands = 0 : i64, tpu.core_type = #tpu.core_type<tc>, window_params = [{transform_indices = @transform_0, window_bounds = array<i64: 16, 96>}, {transform_indices = @transform_1, window_bounds = array<i64: 16, 96>}, {pipeline_mode = #tpu.pipeline_mode<synchronous>, transform_indices = @transform_2, window_bounds = array<i64: 6, 16>}, {pipeline_mode = #tpu.pipeline_mode<synchronous>, transform_indices = @transform_3, window_bounds = array<i64: 480, 180>}, {transform_indices = @transform_4, window_bounds = array<i64: 1, 8, 128>}]} {
    %c0 = arith.constant 0 : index
    %c0_0 = arith.constant 0 : index
    %0 = vector.load %arg1[%c0, %c0_0] : memref<16x96xf32, #tpu.memory_space<vmem>>, vector<16x96xf32>
    %c0_1 = arith.constant 0 : index
    %c0_2 = arith.constant 0 : index
    %1 = vector.load %arg2[%c0_1, %c0_2] : memref<16x96xf32, #tpu.memory_space<vmem>>, vector<16x96xf32>
    %2 = arith.mulf %0, %0 : vector<16x96xf32>
    %3 = arith.mulf %1, %1 : vector<16x96xf32>
    %4 = arith.mulf %0, %1 : vector<16x96xf32>
    %5 = tpu.concatenate %0, %1, %2, %3, %4 in 1 : vector<16x96xf32>, vector<16x96xf32>, vector<16x96xf32>, vector<16x96xf32>, vector<16x96xf32> -> vector<16x480xf32>
    %c0_3 = arith.constant 0 : index
    %c0_4 = arith.constant 0 : index
    %6 = vector.load %arg3[%c0_3, %c0_4] : memref<6x16xf32, #tpu.memory_space<vmem>>, vector<6x16xf32>
    %cst = arith.constant dense<0.000000e+00> : vector<6x480xf32>
    %7 = tpu.matmul %6, %5, %cst {dimension_numbers = #tpu.dot_dimension_numbers<[1], [0], [0], [1], [0, 0, 1, 1], [], []>} : vector<6x16xf32>, vector<16x480xf32>, vector<6x480xf32> -> vector<6x480xf32>
    %c0_5 = arith.constant 0 : index
    %c0_6 = arith.constant 0 : index
    %8 = vector.load %arg4[%c0_5, %c0_6] : memref<480x180xf32, #tpu.memory_space<vmem>>, vector<480x180xf32>
    %cst_7 = arith.constant dense<0.000000e+00> : vector<6x180xf32>
    %9 = tpu.matmul %7, %8, %cst_7 {dimension_numbers = #tpu.dot_dimension_numbers<[1], [0], [0], [1], [0, 0, 1, 1], [], []>} : vector<6x480xf32>, vector<480x180xf32>, vector<6x180xf32> -> vector<6x180xf32>
    %10 = vector.extract_strided_slice %9 {offsets = [0, 0], sizes = [6, 36], strides = [1, 1]} : vector<6x180xf32> to vector<6x36xf32>
    %11 = vector.extract_strided_slice %9 {offsets = [0, 36], sizes = [6, 36], strides = [1, 1]} : vector<6x180xf32> to vector<6x36xf32>
    %12 = vector.extract_strided_slice %9 {offsets = [0, 72], sizes = [6, 36], strides = [1, 1]} : vector<6x180xf32> to vector<6x36xf32>
    %13 = vector.extract_strided_slice %9 {offsets = [0, 108], sizes = [6, 36], strides = [1, 1]} : vector<6x180xf32> to vector<6x36xf32>
    %14 = vector.extract_strided_slice %9 {offsets = [0, 144], sizes = [6, 36], strides = [1, 1]} : vector<6x180xf32> to vector<6x36xf32>
    %15 = arith.mulf %10, %10 : vector<6x36xf32>
    %16 = arith.mulf %11, %11 : vector<6x36xf32>
    %17 = arith.mulf %10, %11 : vector<6x36xf32>
    %18 = arith.subf %12, %15 : vector<6x36xf32>
    %19 = arith.subf %13, %16 : vector<6x36xf32>
    %20 = arith.subf %14, %17 : vector<6x36xf32>
    %cst_8 = arith.constant 2.000000e+00 : f32
    %21 = vector.broadcast %cst_8 : f32 to vector<6x36xf32>
    %22 = arith.mulf %21, %20 : vector<6x36xf32>
    %cst_9 = arith.constant 5.852250e+01 : f32
    %23 = vector.broadcast %cst_9 : f32 to vector<6x36xf32>
    %24 = arith.addf %22, %23 : vector<6x36xf32>
    %25 = arith.addf %18, %19 : vector<6x36xf32>
    %cst_10 = arith.constant 5.852250e+01 : f32
    %26 = vector.broadcast %cst_10 : f32 to vector<6x36xf32>
    %27 = arith.addf %25, %26 : vector<6x36xf32>
    %28 = arith.divf %24, %27 : vector<6x36xf32>
    %cst_11 = arith.constant 2.000000e+00 : f32
    %29 = vector.broadcast %cst_11 : f32 to vector<6x36xf32>
    %30 = arith.mulf %29, %17 : vector<6x36xf32>
    %cst_12 = arith.constant 6.502500e+00 : f32
    %31 = vector.broadcast %cst_12 : f32 to vector<6x36xf32>
    %32 = arith.addf %30, %31 : vector<6x36xf32>
    %33 = arith.addf %15, %16 : vector<6x36xf32>
    %cst_13 = arith.constant 6.502500e+00 : f32
    %34 = vector.broadcast %cst_13 : f32 to vector<6x36xf32>
    %35 = arith.addf %33, %34 : vector<6x36xf32>
    %36 = arith.divf %32, %35 : vector<6x36xf32>
    %37 = arith.mulf %36, %28 : vector<6x36xf32>
    %38 = arith.subf %0, %1 : vector<16x96xf32>
    %39 = math.absf %38 : vector<16x96xf32>
    %40 = vector.shape_cast %39 : vector<16x96xf32> to vector<1x16x96xf32>
    %cst_14 = arith.constant dense<0.000000e+00> : vector<1xf32>
    %41 = vector.multi_reduction <add>, %40, %cst_14 [1, 2] : vector<1x16x96xf32> to vector<1xf32>
    %42 = vector.shape_cast %41 : vector<1xf32> to vector<1x1x1xf32>
    %43 = vector.extract %42[0, 0, 0] : f32 from vector<1x1x1xf32>
    %44 = vector.shape_cast %37 : vector<6x36xf32> to vector<1x6x36xf32>
    %cst_15 = arith.constant dense<0.000000e+00> : vector<1xf32>
    %45 = vector.multi_reduction <add>, %44, %cst_15 [1, 2] : vector<1x6x36xf32> to vector<1xf32>
    %46 = vector.shape_cast %45 : vector<1xf32> to vector<1x1x1xf32>
    %47 = vector.extract %46[0, 0, 0] : f32 from vector<1x1x1xf32>
    %48 = tpu.iota {dimensions = array<i32: 2>} : vector<1x8x128xi32>
    %c0_i32 = arith.constant 0 : i32
    %49 = vector.broadcast %c0_i32 : i32 to vector<1x8x128xi32>
    %50 = arith.cmpi eq, %48, %49 : vector<1x8x128xi32>
    %cst_16 = arith.constant 0.000000e+00 : f32
    %51 = vector.broadcast %43 : f32 to vector<1x8x128xf32>
    %52 = vector.broadcast %cst_16 : f32 to vector<1x8x128xf32>
    %53 = arith.select %50, %51, %52 : vector<1x8x128xi1>, vector<1x8x128xf32>
    %c1_i32 = arith.constant 1 : i32
    %54 = vector.broadcast %c1_i32 : i32 to vector<1x8x128xi32>
    %55 = arith.cmpi eq, %48, %54 : vector<1x8x128xi32>
    %cst_17 = arith.constant 0.000000e+00 : f32
    %56 = vector.broadcast %47 : f32 to vector<1x8x128xf32>
    %57 = vector.broadcast %cst_17 : f32 to vector<1x8x128xf32>
    %58 = arith.select %55, %56, %57 : vector<1x8x128xi1>, vector<1x8x128xf32>
    %59 = arith.addf %53, %58 : vector<1x8x128xf32>
    %c0_18 = arith.constant 0 : index
    %c0_19 = arith.constant 0 : index
    %c0_20 = arith.constant 0 : index
    %60 = vector.load %arg5[%c0_18, %c0_19, %c0_20] : memref<1x8x128xf32, #tpu.memory_space<vmem>>, vector<1x8x128xf32>
    tpu.vector_store %arg5[%c0_18, %c0_19, %c0_20], %59 {strides = array<i32>} : memref<1x8x128xf32, #tpu.memory_space<vmem>>, vector<1x8x128xf32>,
    return
  }
  func.func @transform_0(%arg0: i32) -> (i32, i32) {
    %c0_i32 = arith.constant 0 : i32
    %c0_i32_0 = arith.constant 0 : i32
    return %c0_i32, %arg0 : i32, i32
  }
  func.func @transform_1(%arg0: i32) -> (i32, i32) {
    %c0_i32 = arith.constant 0 : i32
    %c0_i32_0 = arith.constant 0 : i32
    return %c0_i32, %arg0 : i32, i32
  }
  func.func @transform_2(%arg0: i32) -> (i32, i32) {
    %c0_i32 = arith.constant 0 : i32
    %c0_i32_0 = arith.constant 0 : i32
    %c0_i32_1 = arith.constant 0 : i32
    return %c0_i32, %c0_i32_0 : i32, i32
  }
  func.func @transform_3(%arg0: i32) -> (i32, i32) {
    %c0_i32 = arith.constant 0 : i32
    %c0_i32_0 = arith.constant 0 : i32
    %c0_i32_1 = arith.constant 0 : i32
    return %c0_i32, %c0_i32_0 : i32, i32
  }
  func.func @transform_4(%arg0: i32) -> (i32, i32, i32) {
    %c0_i32 = arith.constant 0 : i32
    %c0_i32_0 = arith.constant 0 : i32
    %c0_i32_1 = arith.constant 0 : i32
    return %arg0, %c0_i32, %c0_i32_0 : i32, i32, i32
  }
}

</mosaic_0001>

<bundles_post_ra>
// kernel: tpu_custom_call.1
= control target key start
LH: loop header
LB: loop body
LE: loop exit
PB: predicated region body
PF: predicated region fallthrough
CT: control target
= control target key end

     0   :  { %s616_s21 = smov 96   ;;  %v617_v8 = vmov 0.0   ;;  %s618_s30 = smov 64   ;;  %s1067_s0 = inlined_call_operand.vmem [shape: f32[16,96], index: 0, kind: input, shape index: {}]   ;;  %s1068_s1 = inlined_call_operand.vmem [shape: f32[16,96], index: 1, kind: input, shape index: {}]   ;;  %s1069_s2 = inlined_call_operand.vmem [shape: f32[6,16], index: 2, kind: input, shape index: {}]   ;;  %s1070_s3 = inlined_call_operand.vmem [shape: f32[480,180], index: 3, kind: input, shape index: {}]   ;;  %s1071_s4 = inlined_call_operand.hbm [shape: f32[1,8,128], index: 4, kind: output, shape index: {}]  }
   0x1   :  { %v653_v0 = vld [vmem:[%s1068_s1 + $0x8] sm:$0xff]  ;;  %v658_v1 = vld [vmem:[%s1068_s1] sm:$0xff]  ;;  %v239_v6 = vld [vmem:[%s1070_s3 + $0xf8] sm:$0xff]  ;;  %130 = vmatprep.mubr.f32.mxu1 %v617_v8  ;;  %s619_s11 = smov 32  }
   0x2   :  { %v663_v2 = vld [vmem:[%s1067_s0 + $0x8] sm:$0xff]  ;;  %32 = vrot.lane.b32.xlu0 %v653_v0, %s616_s21  ;;  %30 = vrot.lane.b32.xlu1 %v658_v1, %s616_s21  ;;  %v672_v4 = vld [vmem:[%s1067_s0] sm:$0xff]  ;;  %v25_v11 = vmul.f32 %v653_v0, %v653_v0  ;;  %v24_v12 = vmul.f32 %v658_v1, %v658_v1 }
   0x3   :  { %v23_v3 = vmul.f32 %v663_v2, %v663_v2  ;;  %v22_v5 = vmul.f32 %v672_v4, %v672_v4  ;;  %v238_v7 = vld [vmem:[%s1070_s3 + $0xf0] sm:$0xff]  ;;  %331 = vmatprep.subr.mxu0 %v239_v6  ;;  %v237_v9 = vld [vmem:[%s1070_s3 + $0xe8] sm:$0xff]  ;;  %v236_v10 = vld [vmem:[%s1070_s3 + $0xe0] sm:$0xff] }
   0x4   :  { %332 = vmatpush1.msra.mxu0 %v238_v7  ;;  %v235_v13 = vld [vmem:[%s1070_s3 + $0xd8] sm:$0xff]  ;;  %v234_v14 = vld [vmem:[%s1070_s3 + $0xd0] sm:$0xff]  ;;  %v233_v15 = vld [vmem:[%s1070_s3 + $0xc8] sm:$0xff] }
   0x5   :  { %333 = vmatprep.subr.mxu0 %v237_v9  ;;  %v232_v16 = vld [vmem:[%s1070_s3 + $0xc0] sm:$0xff]  ;;  %v231_v17 = vld [vmem:[%s1070_s3 + $0xb8] sm:$0xff]  ;;  %v230_v18 = vld [vmem:[%s1070_s3 + $0xb0] sm:$0xff] }
   0x6   :  { %40 = vrot.lane.b32.xlu0 %v23_v3, %s618_s30  ;;  %38 = vrot.lane.b32.xlu1 %v22_v5, %s618_s30  ;;  %v229_v19 = vld [vmem:[%s1070_s3 + $0xa8] sm:$0xff]  ;;  %v228_v20 = vld [vmem:[%s1070_s3 + $0xa0] sm:$0xff] }
   0x7   :  { %334 = vmatpush1.msra.mxu0 %v236_v10  ;;  %v227_v21 = vld [vmem:[%s1070_s3 + $0x98] sm:$0xff]  ;;  %v226_v22 = vld [vmem:[%s1070_s3 + $0x90] sm:$0xff]  ;;  %v225_v23 = vld [vmem:[%s1070_s3 + $0x88] sm:$0xff] }
   0x8   :  { %335 = vmatprep.subr.mxu0 %v235_v13  ;;  %v224_v24 = vld [vmem:[%s1070_s3 + $0x80] sm:$0xff]  ;;  %v223_v25 = vld [vmem:[%s1070_s3 + $0x78] sm:$0xff]  ;;  %v222_v26 = vld [vmem:[%s1070_s3 + $0x70] sm:$0xff] }
   0x9   :  { %336 = vmatpush1.msra.mxu0 %v234_v14  ;;  %v221_v27 = vld [vmem:[%s1070_s3 + $0x68] sm:$0xff] }
   0xa   :  { %48 = vrot.lane.b32.xlu0 %v25_v11, %s619_s11  ;;  %46 = vrot.lane.b32.xlu1 %v24_v12, %s619_s11 }
   0xb   :  { %337 = vmatprep.subr.mxu0 %v233_v15 }
   0xc   :  { %338 = vmatpush1.msra.mxu0 %v232_v16 }
   0xd   :  { %339 = vmatprep.subr.mxu0 %v231_v17 }
   0xe   :  { %340 = vmatpush1.msra.mxu0 %v230_v18 }
   0xf   :  { %341 = vmatprep.subr.mxu0 %v229_v19 }
  0x10   :  { %342 = vmatpush1.msra.mxu0 %v228_v20 }
  0x11   :  { %343 = vmatprep.subr.mxu0 %v227_v21 }
  0x12   :  { %344 = vmatpush1.msra.mxu0 %v226_v22 }
  0x13   :  { %345 = vmatprep.subr.mxu0 %v225_v23 }
  0x14   :  { %346 = vmatpush1.msra.mxu0 %v224_v24 }
  0x15   :  { %9 = vsyncpa [#allocation3], 0  ;;  %347 = vmatprep.subr.mxu0 %v223_v25  ;;  %v220_v28 = vld [vmem:[%s1070_s3 + $0x60] sm:$0xff]  ;;  %v219_v29 = vld [vmem:[%s1070_s3 + $0x58] sm:$0xff]  ;;  %vm55_vm0 = vcmask 523264   ;;  %vm52_vm1 = vcmask 785408   ;;  %v27_v16 = vmul.f32 %v653_v0, %v663_v2  ;;  %v26_v21 = vmul.f32 %v658_v1, %v672_v4 }
  0x16   :  { %348 = vmatpush1.msra.mxu0 %v222_v26  ;;  %v218_v30 = vld [vmem:[%s1070_s3 + $0x50] sm:$0xff]  ;;  %v217_v31 = vld [vmem:[%s1070_s3 + $0x48] sm:$0xff]  ;;  %v216_v32 = vld [vmem:[%s1070_s3 + $0x40] sm:$0xff]  ;;  %vm58_vm2 = vcmask 261120   ;;  %vm62_vm3 = vcmask 130048   ;;  %s620_s11 = smov 72  }
  0x17   :  { %349 = vmatprep.subr.mxu0 %v221_v27  ;;  %v215_v33 = vld [vmem:[%s1070_s3 + $0x38] sm:$0xff]  ;;  %v214_v34 = vld [vmem:[%s1070_s3 + $0x30] sm:$0xff]  ;;  %v213_v35 = vld [vmem:[%s1070_s3 + $0x28] sm:$0xff]  ;;  %vm498_vm4 = vcmask 752640   ;;  %s622_s12 = smov 16   ;;  %s623_s13 = smov 112  }
  0x18   :  { %350 = vmatpush1.msra.mxu0 %v220_v28  ;;  %v212_v36 = vld [vmem:[%s1070_s3 + $0x20] sm:$0xff]  ;;  %v211_v37 = vld [vmem:[%s1070_s3 + $0x18] sm:$0xff]  ;;  %v210_v38 = vld [vmem:[%s1070_s3 + $0x10] sm:$0xff]  ;;  %vm539_vm5 = vcmask 291840   ;;  %s624_s16 = smov [#allocation2]  }
  0x19   :  { %351 = vmatprep.subr.mxu0 %v219_v29  ;;  %v209_v39 = vld [vmem:[%s1070_s3 + $0x8] sm:$0xff]  ;;  %v208_v40 = vld [vmem:[%s1070_s3] sm:$0xff]  ;;  %v271_v41 = vld [vmem:[%s1070_s3 + $0x1f8] sm:$0xff]  ;;  %s566_s17 = sshll.u32 %s624_s16, 4  ;;  %s567_s17 = int_to_ptr.vmem [resolvable:$true] %s566_s17 }
  0x1a   :  { %352 = vmatpush1.msra.mxu0 %v218_v30  ;;  %v270_v42 = vld [vmem:[%s1070_s3 + $0x1f0] sm:$0xff]  ;;  %v269_v43 = vld [vmem:[%s1070_s3 + $0x1e8] sm:$0xff]  ;;  %v268_v44 = vld [vmem:[%s1070_s3 + $0x1e0] sm:$0xff]  ;;  %s594_s18 = scalar_lea.vmem %s567_s17, 128  ;;  %p599_p1 = scmp.lt.s32.totalorder %s567_s17, %s567_s17 }
  0x1b   :  { %353 = vmatprep.subr.mxu0 %v217_v31  ;;  %v267_v45 = vld [vmem:[%s1070_s3 + $0x1d8] sm:$0xff]  ;;  %v266_v46 = vld [vmem:[%s1070_s3 + $0x1d0] sm:$0xff]  ;;  %v265_v47 = vld [vmem:[%s1070_s3 + $0x1c8] sm:$0xff]  ;;  %p595_p0 = scmp.ne.s32.totalorder %s567_s17, %s594_s18  ;;  %p600_p2 = scmp.lt.s32.totalorder %s594_s18, %s594_s18 }
  0x1c   :  { %354 = vmatpush1.msra.mxu0 %v216_v32  ;;  %v264_v48 = vld [vmem:[%s1070_s3 + $0x1c0] sm:$0xff]  ;;  %v263_v49 = vld [vmem:[%s1070_s3 + $0x1b8] sm:$0xff]  ;;  %v262_v50 = vld [vmem:[%s1070_s3 + $0x1b0] sm:$0xff] }
  0x1d   :  { %355 = vmatprep.subr.mxu0 %v215_v33  ;;  %v261_v51 = vld [vmem:[%s1070_s3 + $0x1a8] sm:$0xff]  ;;  %v260_v52 = vld [vmem:[%s1070_s3 + $0x1a0] sm:$0xff]  ;;  %v259_v53 = vld [vmem:[%s1070_s3 + $0x198] sm:$0xff]  ;;  %p601_p3 = por %p600_p2, %p599_p1 }
  0x1e   :  { %356 = vmatpush1.msra.mxu0 %v214_v34  ;;  %v258_v54 = vld [vmem:[%s1070_s3 + $0x190] sm:$0xff]  ;;  %v257_v55 = vld [vmem:[%s1070_s3 + $0x188] sm:$0xff]  ;;  %v256_v56 = vld [vmem:[%s1070_s3 + $0x180] sm:$0xff] }
  0x1f   :  { %357 = vmatprep.subr.mxu0 %v213_v35  ;;  %v255_v57 = vld [vmem:[%s1070_s3 + $0x178] sm:$0xff]  ;;  %v254_v58 = vld [vmem:[%s1070_s3 + $0x170] sm:$0xff]  ;;  %v253_v59 = vld [vmem:[%s1070_s3 + $0x168] sm:$0xff]  ;;  %p602_p4 = pnand %p601_p3, %p595_p0 }
  0x20   :  { %358 = vmatpush1.msra.mxu0 %v212_v36  ;;  %v252_v60 = vld [vmem:[%s1070_s3 + $0x160] sm:$0xff]  ;;  %v251_v61 = vld [vmem:[%s1070_s3 + $0x158] sm:$0xff]  ;;  %v250_v62 = vld [vmem:[%s1070_s3 + $0x150] sm:$0xff] }
  0x21   :  { %359 = vmatprep.subr.mxu0 %v211_v37  ;;  %v249_v63 = vld [vmem:[%s1070_s3 + $0x148] sm:$0xff]  ;;  %v248_v3 = vld [vmem:[%s1070_s3 + $0x140] sm:$0xff]  ;;  %v247_v5 = vld [vmem:[%s1070_s3 + $0x138] sm:$0xff] }
  0x22   :  { %360 = vmatpush1.msra.mxu0 %v210_v38  ;;  %v246_v6 = vld [vmem:[%s1070_s3 + $0x130] sm:$0xff]  ;;  %v245_v7 = vld [vmem:[%s1070_s3 + $0x128] sm:$0xff]  ;;  %v244_v9 = vld [vmem:[%s1070_s3 + $0x120] sm:$0xff] }
  0x23   :  { %361 = vmatprep.subr.mxu0 %v209_v39  ;;  %v61_v18 = vld [vmem:[%s1069_s2] sm:$0x3f]  ;;  %v303_v24 = vld [vmem:[%s1070_s3 + $0x2f8] sm:$0xff]  ;;  %v302_v26 = vld [vmem:[%s1070_s3 + $0x2f0] sm:$0xff] }
  0x24   :  { %362 = vmatpush1.msra.mxu0 %v208_v40  ;;  %v301_v27 = vld [vmem:[%s1070_s3 + $0x2e8] sm:$0xff]  ;;  %v299_v28 = vld [vmem:[%s1070_s3 + $0x2d8] sm:$0xff]  ;;  %v298_v29 = vld [vmem:[%s1070_s3 + $0x2d0] sm:$0xff] }
  0x25   :  { %363 = vmatprep.subr.mxu0 %v271_v41  ;;  %v297_v30 = vld [vmem:[%s1070_s3 + $0x2c8] sm:$0xff]  ;;  %v296_v31 = vld [vmem:[%s1070_s3 + $0x2c0] sm:$0xff]  ;;  %v295_v32 = vld [vmem:[%s1070_s3 + $0x2b8] sm:$0xff] }
  0x26   :  { %364 = vmatpush2.msra.mxu0 %v270_v42  ;;  %v294_v33 = vld [vmem:[%s1070_s3 + $0x2b0] sm:$0xff]  ;;  %v293_v34 = vld [vmem:[%s1070_s3 + $0x2a8] sm:$0xff]  ;;  %v292_v35 = vld [vmem:[%s1070_s3 + $0x2a0] sm:$0xff] }
  0x27   :  { %365 = vmatprep.subr.mxu0 %v269_v43  ;;  %v291_v36 = vld [vmem:[%s1070_s3 + $0x298] sm:$0xff]  ;;  %v290_v37 = vld [vmem:[%s1070_s3 + $0x290] sm:$0xff]  ;;  %v289_v38 = vld [vmem:[%s1070_s3 + $0x288] sm:$0xff] }
  0x28   :  { %366 = vmatpush2.msra.mxu0 %v268_v44  ;;  %v288_v39 = vld [vmem:[%s1070_s3 + $0x280] sm:$0xff]  ;;  %v287_v40 = vld [vmem:[%s1070_s3 + $0x278] sm:$0xff]  ;;  %v286_v41 = vld [vmem:[%s1070_s3 + $0x270] sm:$0xff] }
  0x29   :  { %367 = vmatprep.subr.mxu0 %v267_v45  ;;  %v285_v42 = vld [vmem:[%s1070_s3 + $0x268] sm:$0xff]  ;;  %v284_v43 = vld [vmem:[%s1070_s3 + $0x260] sm:$0xff]  ;;  %v283_v44 = vld [vmem:[%s1070_s3 + $0x258] sm:$0xff] }
  0x2a   :  { %368 = vmatpush2.msra.mxu0 %v266_v46  ;;  %v282_v45 = vld [vmem:[%s1070_s3 + $0x250] sm:$0xff]  ;;  %v281_v46 = vld [vmem:[%s1070_s3 + $0x248] sm:$0xff] }
  0x2b   :  { %369 = vmatprep.subr.mxu0 %v265_v47  ;;  %v280_v47 = vld [vmem:[%s1070_s3 + $0x240] sm:$0xff] }
  0x2c   :  { %370 = vmatpush2.msra.mxu0 %v264_v48  ;;  %v279_v48 = vld [vmem:[%s1070_s3 + $0x238] sm:$0xff] }
  0x2d   :  { %371 = vmatprep.subr.mxu0 %v263_v49  ;;  %v278_v49 = vld [vmem:[%s1070_s3 + $0x230] sm:$0xff] }
  0x2e   :  { %372 = vmatpush2.msra.mxu0 %v262_v50  ;;  %v277_v50 = vld [vmem:[%s1070_s3 + $0x228] sm:$0xff] }
  0x2f   :  { %373 = vmatprep.subr.mxu0 %v261_v51  ;;  %v276_v51 = vld [vmem:[%s1070_s3 + $0x220] sm:$0xff] }
  0x30   :  { %374 = vmatpush2.msra.mxu0 %v260_v52  ;;  %v275_v52 = vld [vmem:[%s1070_s3 + $0x218] sm:$0xff] }
  0x31   :  { %375 = vmatprep.subr.mxu0 %v259_v53  ;;  %v274_v53 = vld [vmem:[%s1070_s3 + $0x210] sm:$0xff] }
  0x32   :  { %376 = vmatpush2.msra.mxu0 %v258_v54  ;;  %v273_v54 = vld [vmem:[%s1070_s3 + $0x208] sm:$0xff] }
  0x33   :  { %377 = vmatprep.subr.mxu0 %v257_v55  ;;  %v272_v55 = vld [vmem:[%s1070_s3 + $0x200] sm:$0xff] }
  0x34   :  { %378 = vmatpush2.msra.mxu0 %v256_v56  ;;  %v327_v56 = vld [vmem:[%s1070_s3 + $0x3b8] sm:$0xff] }
  0x35   :  { %379 = vmatprep.subr.mxu0 %v255_v57  ;;  %v326_v57 = vld [vmem:[%s1070_s3 + $0x3b0] sm:$0xff] }
  0x36   :  { %380 = vmatpush2.msra.mxu0 %v254_v58  ;;  %v325_v58 = vld [vmem:[%s1070_s3 + $0x3a8] sm:$0xff] }
  0x37   :  { %381 = vmatprep.subr.mxu0 %v253_v59  ;;  %v324_v59 = vld [vmem:[%s1070_s3 + $0x3a0] sm:$0xff] }
  0x38   :  { %382 = vmatpush2.msra.mxu0 %v252_v60  ;;  %v323_v60 = vld [vmem:[%s1070_s3 + $0x398] sm:$0xff] }
  0x39   :  { %383 = vmatprep.subr.mxu0 %v251_v61  ;;  %v322_v61 = vld [vmem:[%s1070_s3 + $0x390] sm:$0xff] }
  0x3a   :  { %384 = vmatpush2.msra.mxu0 %v250_v62  ;;  %v321_v62 = vld [vmem:[%s1070_s3 + $0x388] sm:$0xff] }
  0x3b   :  { %385 = vmatprep.subr.mxu0 %v249_v63  ;;  %v320_v63 = vld [vmem:[%s1070_s3 + $0x380] sm:$0xff] }
  0x3c   :  { %386 = vmatpush2.msra.mxu0 %v248_v3  ;;  %v319_v3 = vld [vmem:[%s1070_s3 + $0x378] sm:$0xff] }
  0x3d   :  { %387 = vmatprep.subr.mxu0 %v247_v5  ;;  %v318_v5 = vld [vmem:[%s1070_s3 + $0x370] sm:$0xff] }
  0x3e   :  { %388 = vmatpush2.msra.mxu0 %v246_v6  ;;  %v317_v6 = vld [vmem:[%s1070_s3 + $0x368] sm:$0xff] }
  0x3f   :  { %389 = vmatprep.subr.mxu0 %v245_v7  ;;  %v316_v7 = vld [vmem:[%s1070_s3 + $0x360] sm:$0xff] }
  0x40   :  { %390 = vmatpush2.msra.mxu0 %v244_v9  ;;  %v315_v9 = vld [vmem:[%s1070_s3 + $0x358] sm:$0xff] }
  0x74   :  { %v33_v10 = vpop.permute.xlu0 %32  ;;  %v31_v11 = vpop.permute.xlu1 %30 }
  0x75   :  { %v54_v15 = vsel %vm52_vm1, %v663_v2, %v33_v10  ;;  %v53_v20 = vsel %vm52_vm1, %v672_v4, %v31_v11 }
  0x78   :  { %v41_v12 = vpop.permute.xlu0 %40  ;;  %v39_v13 = vpop.permute.xlu1 %38 }
  0x79   :  { %v57_v14 = vsel %vm55_vm0, %v33_v10, %v41_v12  ;;  %v56_v17 = vsel %vm55_vm0, %v31_v11, %v39_v13  ;;  %v314_v10 = vld [vmem:[%s1070_s3 + $0x350] sm:$0xff]  ;;  %v313_v11 = vld [vmem:[%s1070_s3 + $0x348] sm:$0xff] }
  0x7a   :  { %94 = vmatprep.subr.mxu1 %v57_v14  ;;  %v311_v14 = vld [vmem:[%s1070_s3 + $0x338] sm:$0xff] }
  0x7b   :  { %95 = vmatpush1.msra.mxu1 %v54_v15  ;;  %v242_v15 = vld [vmem:[%s1070_s3 + $0x110] sm:$0xff] }
  0x7c   :  { %v49_v19 = vpop.permute.xlu0 %48  ;;  %96 = vmatprep.subr.mxu1 %v56_v17  ;;  %v47_v23 = vpop.permute.xlu1 %46  ;;  %v241_v17 = vld [vmem:[%s1070_s3 + $0x108] sm:$0xff] }
  0x7d   :  { %v60_v22 = vsel %vm58_vm2, %v41_v12, %v49_v19  ;;  %97 = vmatpush1.msra.mxu1 %v53_v20  ;;  %v59_v25 = vsel %vm58_vm2, %v39_v13, %v47_v23  ;;  %v312_v12 = vld [vmem:[%s1070_s3 + $0x340] sm:$0xff]  ;;  %v243_v13 = vld [vmem:[%s1070_s3 + $0x118] sm:$0xff]  ;;  %v305_v23 = vld [vmem:[%s1070_s3 + $0x308] sm:$0xff] }
  0x7e   :  { %574 = vmatmul.mubr.msk.f32.vlgmr.msra.gmra.mxu1 %vm62_vm3, %v61_v18  ;;  %165 = vmatprep.subr.mxu1 %v27_v16  ;;  %v310_v16 = vld [vmem:[%s1070_s3 + $0x330] sm:$0xff]  ;;  %v240_v19 = vld [vmem:[%s1070_s3 + $0x100] sm:$0xff] }
  0x7f   :  { %166 = vmatpush1.msra.mxu1 %v60_v22  ;;  %201 = vmatprep.mubr.f32.mxu1 %v617_v8  ;;  %v300_v8 = vld [vmem:[%s1070_s3 + $0x2e0] sm:$0xff]  ;;  %v306_v22 = vld [vmem:[%s1070_s3 + $0x310] sm:$0xff] }
  0x80   :  { %167 = vmatprep.subr.mxu1 %v26_v21  ;;  %391 = vmatprep.subr.mxu0 %v243_v13  ;;  %v308_v20 = vld [vmem:[%s1070_s3 + $0x320] sm:$0xff]  ;;  %v307_v21 = vld [vmem:[%s1070_s3 + $0x318] sm:$0xff] }
  0x81   :  { %168 = vmatpush1.msra.mxu1 %v59_v25  ;;  %392 = vmatpush2.msra.mxu0 %v242_v15 }
  0x82   :  { %575 = vmatmul.mubr.msk.f32.vlgmr.msra.gmra.mxu1 %vm62_vm3, %v61_v18  ;;  %402 = vmatprep.subr.mxu1 %v303_v24  ;;  %v309_v18 = vld [vmem:[%s1070_s3 + $0x328] sm:$0xff]  ;;  %v304_v24 = vld [vmem:[%s1070_s3 + $0x300] sm:$0xff]  ;;  %s621_s3 = smov 92  }
  0x83   :  { %403 = vmatpush1.msra.mxu1 %v302_v26  ;;  %393 = vmatprep.subr.mxu0 %v241_v17 }
  0x84   :  { %404 = vmatprep.subr.mxu1 %v301_v27  ;;  %394 = vmatpush2.msra.mxu0 %v240_v19 }
  0x85   :  { %405 = vmatpush1.msra.mxu1 %v300_v8 }
  0x86   :  { %406 = vmatprep.subr.mxu1 %v299_v28 }
  0x87   :  { %407 = vmatpush1.msra.mxu1 %v298_v29 }
  0x88   :  { %408 = vmatprep.subr.mxu1 %v297_v30 }
  0x89   :  { %409 = vmatpush1.msra.mxu1 %v296_v31 }
  0x8a   :  { %410 = vmatprep.subr.mxu1 %v295_v32 }
  0x8b   :  { %411 = vmatpush1.msra.mxu1 %v294_v33 }
  0x8c   :  { %412 = vmatprep.subr.mxu1 %v293_v34 }
  0x8d   :  { %413 = vmatpush1.msra.mxu1 %v292_v35 }
  0x8e   :  { %414 = vmatprep.subr.mxu1 %v291_v36 }
  0x8f   :  { %415 = vmatpush1.msra.mxu1 %v290_v37 }
  0x90   :  { %416 = vmatprep.subr.mxu1 %v289_v38 }
  0x91   :  { %417 = vmatpush1.msra.mxu1 %v288_v39 }
  0x92   :  { %418 = vmatprep.subr.mxu1 %v287_v40 }
  0x93   :  { %419 = vmatpush1.msra.mxu1 %v286_v41 }
  0x94   :  { %420 = vmatprep.subr.mxu1 %v285_v42 }
  0x95   :  { %421 = vmatpush1.msra.mxu1 %v284_v43 }
  0x96   :  { %422 = vmatprep.subr.mxu1 %v283_v44 }
  0x97   :  { %423 = vmatpush1.msra.mxu1 %v282_v45  ;;  %v523_v45 = vsub.f32 %v672_v4, %v658_v1 }
  0x98   :  { %424 = vmatprep.subr.mxu1 %v281_v46  ;;  %v524_v46 = vsub.f32 %v663_v2, %v653_v0 }
  0x99   :  { %425 = vmatpush1.msra.mxu1 %v280_v47  ;;  %v525_v47 = vand.u32 2147483647, %v523_v45 }
  0x9a   :  { %426 = vmatprep.subr.mxu1 %v279_v48  ;;  %v526_v48 = vand.u32 2147483647, %v524_v46 }
  0x9b   :  { %427 = vmatpush1.msra.mxu1 %v278_v49  ;;  %v527_v49 = vsel %vm52_vm1, %v525_v47, 0.0 }
  0x9c   :  { %428 = vmatprep.subr.mxu1 %v277_v50  ;;  %v528_v50 = vsel %vm52_vm1, %v526_v48, 0.0 }
  0x9d   :  { %429 = vmatpush1.msra.mxu1 %v276_v51  ;;  %v529_v51 = vadd.f32 %v528_v50, %v527_v49 }
  0x9e   :  { %430 = vmatprep.subr.mxu1 %v275_v52 }
  0x9f   :  { %431 = vmatpush1.msra.mxu1 %v274_v53 }
  0xa0   :  { %432 = vmatprep.subr.mxu1 %v273_v54 }
  0xa1   :  { %433 = vmatpush1.msra.mxu1 %v272_v55 }
  0xa2   :  { %442 = vmatprep.subr.mxu1 %v327_v56 }
  0xa3   :  { %443 = vmatpush2.msra.mxu1 %v326_v57 }
  0xa4   :  { %444 = vmatprep.subr.mxu1 %v325_v58 }
  0xa5   :  { %445 = vmatpush2.msra.mxu1 %v324_v59 }
  0xa6   :  { %446 = vmatprep.subr.mxu1 %v323_v60 }
  0xa7   :  { %447 = vmatpush2.msra.mxu1 %v322_v61 }
  0xa8   :  { %448 = vmatprep.subr.mxu1 %v321_v62 }
  0xa9   :  { %449 = vmatpush2.msra.mxu1 %v320_v63 }
  0xaa   :  { %450 = vmatprep.subr.mxu1 %v319_v3 }
  0xab   :  { %451 = vmatpush2.msra.mxu1 %v318_v5 }
  0xac   :  { %452 = vmatprep.subr.mxu1 %v317_v6 }
  0xad   :  { %453 = vmatpush2.msra.mxu1 %v316_v7 }
  0xae   :  { %454 = vmatprep.subr.mxu1 %v315_v9 }
  0xaf   :  { %455 = vmatpush2.msra.mxu1 %v314_v10 }
  0xb0   :  { %456 = vmatprep.subr.mxu1 %v313_v11 }
  0xb1   :  { %457 = vmatpush2.msra.mxu1 %v312_v12 }
  0xb2   :  { %458 = vmatprep.subr.mxu1 %v311_v14 }
  0xb3   :  { %459 = vmatpush2.msra.mxu1 %v310_v16 }
  0xb4   :  { %460 = vmatprep.subr.mxu1 %v309_v18 }
  0xb5   :  { %461 = vmatpush2.msra.mxu1 %v308_v20  ;;  %v550_v20 = vlaneseq }
  0xb6   :  { %462 = vmatprep.subr.mxu1 %v307_v21 }
  0xb7   :  { %463 = vmatpush2.msra.mxu1 %v306_v22  ;;  %v551_v21 = vand.u32 127, %v550_v20 }
  0xb8   :  { %464 = vmatprep.subr.mxu1 %v305_v23 }
  0xb9   :  { %465 = vmatpush2.msra.mxu1 %v304_v24  ;;  %vm552_vm6 = vcmp.eq.s32.totalorder %v551_v21, 0  ;;  %vm555_vm7 = vcmp.eq.s32.totalorder %v551_v21, 1 }
 0x13e   :  { %v132_v25 = vpop.f32.mrf.mxu1 }
 0x140   :  { %v134_v26 = vpop.f32.mrf.mxu1 }
 0x141   :  { %395 = vmatprep.mubr.f32.mxu0 %v134_v26 }
 0x142   :  { %v203_v27 = vpop.f32.mrf.mxu1  ;;  %396 = vmatmul.mubr.f32.vlgmr.msra.gmra.mxu0 %v132_v25 }
 0x144   :  { %v205_v8 = vpop.f32.mrf.mxu1 }
 0x145   :  { %576 = vmatprep.mubr.msk.f32.mxu1 %vm52_vm1, %v205_v8 }
 0x146   :  { %467 = vmatmul.mubr.f32.vlgmr.msra.gmra.mxu1 %v203_v27 }
 0x202   :  { %v397_v28 = vpop.f32.mrf.mxu0 }
 0x204   :  { %v399_v33 = vpop.f32.mrf.mxu0 }
 0x206   :  { %v468_v29 = vpop.f32.mrf.mxu1 }
 0x207   :  { %v469_v30 = vadd.f32 %v468_v29, %v397_v28 }
 0x208   :  { %v470_v32 = vpop.f32.mrf.mxu1 }
 0x209   :  { %v473_v31 = vmul.f32 %v469_v30, %v469_v30  ;;  %v471_v34 = vadd.f32 %v470_v32, %v399_v33 }
 0x20b   :  { %480 = vrot.lane.b32.xlu0 %v473_v31, %s620_s11 }
 0x27d   :  { %v481_v35 = vpop.permute.xlu0 %480 }
 0x27e   :  { %v483_v36 = vsub.f32 %v469_v30, %v481_v35  ;;  %v484_v37 = vsub.f32 %v471_v34, %v481_v35 }
 0x280   :  { %496 = vrot.lane.b32.xlu0 %v484_v37, %s621_s3  ;;  %494 = vrot.lane.b32.xlu1 %v483_v36, %s621_s3 }
 0x284   :  { %475 = vrot.lane.b32.xlu1 %v469_v30, %s621_s3 }
 0x2f2   :  { %v497_v38 = vpop.permute.xlu0 %496  ;;  %v495_v39 = vpop.permute.xlu1 %494 }
 0x2f3   :  { %v499_v40 = vsel %vm498_vm4, %v495_v39, %v497_v38 }
 0x2f4   :  { %v501_v41 = vadd.f32 %v499_v40, %v483_v36 }
 0x2f6   :  { %v502_v42 = vadd.f32 58.5225, %v501_v41  ;;  %v476_v43 = vpop.permute.xlu1 %475 }
 0x2f7   :  { %v478_v44 = vmul.f32 %v476_v43, %v469_v30 }
 0x2f8   :  { %504 = vrot.lane.b32.xlu0 %v502_v42, %s620_s11 }
 0x2f9   :  { %486 = vrot.lane.b32.xlu1 %v478_v44, %s622_s12  ;;  %v509_v4 = vmul.f32 2.0, %v478_v44 }
 0x2fb   :  { %v510_v60 = vadd.f32 6.5025, %v509_v4 }
 0x2fc   :  { %511 = vrot.lane.b32.xlu0 %v473_v31, %s621_s3 }
 0x31b   :  { %530 = vadd.xlane.f32.xlu0 %v529_v51 }
 0x36a   :  { %v505_v52 = vpop.permute.xlu0 %504 }
 0x36b   :  { %590 = vrcp.f32 %v505_v52  ;;  %v487_v53 = vpop.permute.xlu1 %486 }
 0x36c   :  { %v489_v54 = vsub.f32 %v471_v34, %v487_v53 }
 0x36e   :  { %v490_v55 = vmul.f32 2.0, %v489_v54  ;;  %v512_v1 = vpop.permute.xlu0 %511 }
 0x36f   :  { %v514_v0 = vadd.f32 %v512_v1, %v473_v31 }
 0x370   :  { %v491_v56 = vadd.f32 58.5225, %v490_v55 }
 0x371   :  { %v515_v2 = vadd.f32 6.5025, %v514_v0 }
 0x373   :  { %592 = vrcp.f32 %v515_v2 }
 0x378   :  { %v591_v57 = vpop.eup %590 }
 0x379   :  { %v508_v58 = vmul.f32 %v591_v57, %v491_v56 }
 0x37b   :  { %519 = vrot.lane.b32.xlu1 %v508_v58, %s623_s13 }
 0x380   :  { %v593_v59 = vpop.eup %592 }
 0x381   :  { %v517_v61 = vmul.f32 %v593_v59, %v510_v60 }
 0x3a4   :  { %v531_v62 = vpop.xlane.xlu0 %530 }
 0x3a5   :  { %v532_v5 = vrot.slane %v531_v62, 4 }
 0x3a7   :  { %v533_v7 = vadd.f32 %v532_v5, %v531_v62 }
 0x3a9   :  { %v534_v9 = vrot.slane %v533_v7, 2 }
 0x3ab   :  { %v535_v10 = vadd.f32 %v534_v9, %v533_v7 }
 0x3ad   :  { %v536_v11 = vrot.slane %v535_v10, 1 }
 0x3af   :  { %v537_v12 = vadd.f32 %v536_v11, %v535_v10 }
 0x3b1   :  { %577 = vpush %v537_v12 }
 0x3e2   :  { %s578_s14 = spop %577 }
 0x3e3   :  { %v553_v22 = vstv %s578_s14 }
 0x3e4   :  { %v554_v24 = vsel %vm552_vm6, %v553_v22, 0.0 }
 0x3ed   :  { %v520_v63 = vpop.permute.xlu1 %519 }
 0x3ee   :  { %v522_v3 = vmul.f32 %v520_v63, %v517_v61 }
 0x3f0   :  { %v540_v6 = vsel %vm539_vm5, %v522_v3, 0.0 }
 0x3f1   :  { %541 = vadd.xlane.f32.xlu1 %v540_v6 }
 0x47a   :  { %v542_v13 = vpop.xlane.xlu1 %541 }
 0x47b   :  { %v543_v14 = vrot.slane %v542_v13, 4 }
 0x47d   :  { %v544_v15 = vadd.f32 %v543_v14, %v542_v13 }
 0x47f   :  { %v545_v16 = vrot.slane %v544_v15, 2 }
 0x481   :  { %v546_v17 = vadd.f32 %v545_v16, %v544_v15 }
 0x483   :  { %v547_v18 = vrot.slane %v546_v17, 1 }
 0x485   :  { %v548_v19 = vadd.f32 %v547_v18, %v546_v17 }
 0x487   :  { %579 = vpush %v548_v19 }
 0x4b8   :  { %s580_s15 = spop %579 }
 0x4b9   :  { %v556_v23 = vstv %s580_s15 }
 0x4ba   :  { %v557_v25 = vsel %vm555_vm7, %v556_v23, 0.0 }
 0x4bb   :  { %v558_v26 = vadd.f32 %v557_v25, %v554_v24 }
 0x4bd   :  { %559 = vst [vmem:[#allocation2] sm:$0xff] %v558_v26 }
 0x4be   :  { %605 = shalt.err (!%p602_p4)
}
 0x4bf   :  { %569 = dma.vmem_to_hbm [thread:$0]  %s567_s17, 128, %s1071_s4, [#allocation3]  }
 0x4c0   :  { %614 = dma.done.wait [#allocation3], 128  }
 0x4c1   :  { %615 = vsyncadd [#allocation3], 4294967168 }
 0x4c2   :  { %573 = vsyncpa [#allocation3], 1 }

</bundles_post_ra>
